<compile_context>
chip_gen: v7x
topology: tpu7x:2x2x1
jax: 0.10.0
libtpu: 0.0.40
codegen_flags: <defaults>
</compile_context>

<pallas_src>
import functools

import jax
import jax.numpy as jnp
from jax.experimental import pallas as pl
from jax.experimental.pallas import tpu as pltpu


# ---------------------------------------------------------------------------
# hardware / tiling helpers
# ---------------------------------------------------------------------------

def _vmem_physical_bytes() -> int:
    """Physical VMEM of the attached TPU (conservative 64 MiB fallback)."""
    try:
        cap = getattr(pltpu.get_tpu_info(), "vmem_capacity_bytes", None)
        if cap:
            return int(cap)
    except Exception:
        pass
    return 64 << 20


def _row_tile(rows_total: int, cap_rows: int) -> int:
    """Per-grid-step row tile: multiple of 8, and >= 2 grid steps once there is
    enough work so ("parallel",) can shard across v7x's two TensorCores."""
    if rows_total <= 8:
        return rows_total                       # single full-array block (legal)
    split = 8 * pl.cdiv(rows_total, 16)
    return max(8, (min(cap_rows, split) // 8) * 8)


def _select_pack(num_codes: int, embed_dim: int, *,
                 max_packed_codes: int = 1024) -> int:
    """Lane-packing factor: `pack` gathered rows per 128-lane output row.

    Only profitable while the packed code axis (pack*K) stays small: the
    one-hot build is VALU work proportional to pack*K and must stay under the
    masked-store penalty it avoids (bound tightened from 4096 to 1024)."""
    if embed_dim >= 128 or 128 % embed_dim != 0:
        return 1
    pack = 128 // embed_dim
    while pack > 1 and pack * num_codes > max_packed_codes:
        pack //= 2
    return pack


def _pack_codebook(weight: jax.Array, pack: int, compute_dtype) -> jax.Array:
    """Block-diagonal packed codebook (pack*K, pack*D); identity for pack==1."""
    w = weight.astype(compute_dtype)
    if pack == 1:
        return w
    K, D = weight.shape
    zeros = jnp.zeros((K, D), compute_dtype)
    rows = []
    for j in range(pack):
        row = [zeros] * pack
        row[j] = w
        rows.append(jnp.concatenate(row, axis=1))
    return jnp.concatenate(rows, axis=0)


def pack_codebook(weight: jax.Array, compute_dtype=None) -> jax.Array:
    """Precompute the packed codebook for the resident (small-K) path.

    Call once per EMA weight update and pass the result as `packed_weight=` to
    embedding_ema_forward so the forward path does not re-pack every call."""
    K, D = weight.shape
    cdt = jnp.dtype(compute_dtype) if compute_dtype is not None \
        else jnp.dtype(weight.dtype)
    return _pack_codebook(weight, _select_pack(K, D), cdt)


# ---------------------------------------------------------------------------
# regime 1: resident codebook, one-hot x packed-codebook matmul on the MXU
# ---------------------------------------------------------------------------

def _onehot_gather_kernel(idx_ref, w_ref, o_ref, *, pack: int, num_codes: int):
    """o[r, :] = concat_j weight[idx[r, j]] via one-hot @ packed codebook.

    idx_ref: (tm_rows, pack) int32
    w_ref  : (pack*K, pack*D)  block-diagonal packed codebook (resident)
    o_ref  : (tm_rows, pack*D) lane-dense output tile (full-width vst)
    """
    idx = idx_ref[...]
    rows = idx.shape[0]
    kp = w_ref.shape[0]                         # pack * K

    # Single-compare one-hot: per-lane target index (lane group j holds
    # idx[:, j] + j*K), built with pack-1 selects over *static* lane-group
    # boundaries, then one compare -- roughly half the big-vreg VALU passes of
    # the pack-compares + pack-1-ORs formulation.  Out-of-range indices can
    # never match their lane group, so they cleanly produce all-zero rows.
    lanes = jax.lax.broadcasted_iota(jnp.int32, (rows, kp), 1)
    target = idx[:, 0:1]
    for j in range(1, pack):
        target = jnp.where(lanes >= j * num_codes,
                           idx[:, j:j + 1] + j * num_codes, target)
    onehot = (lanes == target).astype(w_ref.dtype)   # 0/1 exact in bf16 too

    o_ref[...] = jnp.dot(onehot, w_ref[...],
                         preferred_element_type=jnp.float32).astype(o_ref.dtype)


def _onehot_gather_forward(flat, weight, w_packed, orig_shape, *, pack, cdt,
                           phys_vmem, vmem_cap, max_rows):
    K, D = weight.shape
    M = int(flat.shape[0])
    kp, out_w = pack * K, pack * D
    out_isize = jnp.dtype(weight.dtype).itemsize
    cdt_isize = jnp.dtype(cdt).itemsize

    if w_packed is None:
        # Per-call packing fallback (<= 512 KiB given pack*K <= 1024); prefer
        # pack_codebook() once per EMA weight update to hoist this entirely.
        w_packed = _pack_codebook(weight, pack, cdt)

    # Pad M up to a multiple of `pack` with index 0 (a valid row) so every
    # tile stays lane-dense; padded rows are sliced off below (costs at most
    # pack-1 gathered rows, never a masked-store fallback).
    m_pad = pl.cdiv(M, pack) * pack
    if m_pad != M:
        flat = jnp.concatenate([flat, jnp.zeros((m_pad - M,), jnp.int32)])
    rows_total = m_pad // pack
    idx2d = flat.reshape(rows_total, pack)

    # ---- VMEM budget -> row tile (includes the one-hot/iota intermediates) --
    w_bytes = kp * out_w * cdt_isize
    per_row = (2 * out_w * out_isize            # output block (double buffered)
               + 2 * pack * 4                   # index block  (double buffered)
               + kp * (cdt_isize + 8)           # one-hot + iota/target (int32)
               + out_w * 4)                     # f32 matmul result / pre-cast
    if max_rows is None:
        # v7x (64 MiB physical VMEM) keeps 512-row tiles; v5e/v6e go to 1024.
        max_rows = 512 if phys_vmem <= (64 << 20) else 1024
    max_rows = max(8, (max_rows // 8) * 8)
    slack = 4 << 20
    budget = vmem_cap - 2 * w_bytes - slack     # 2x: codebook worst-case 2 bufs
    rows_cap = max(8, min(max_rows, (budget // per_row) // 8 * 8))
    tm_rows = _row_tile(rows_total, rows_cap)
    grid = pl.cdiv(rows_total, tm_rows)

    vmem_limit = int(min(vmem_cap,
                         max(32 << 20, 2 * w_bytes + tm_rows * per_row + slack)))

    cost = pl.CostEstimate(
        flops=2 * rows_total * kp * out_w,
        transcendentals=0,
        bytes_accessed=int(m_pad * 4 + m_pad * D * out_isize + w_bytes),
    )

    kernel = functools.partial(_onehot_gather_kernel, pack=pack, num_codes=K)

    def call(w_spec):
        return pl.pallas_call(
            kernel,
            out_shape=jax.ShapeDtypeStruct((rows_total, out_w), weight.dtype),
            grid_spec=pltpu.PrefetchScalarGridSpec(
                num_scalar_prefetch=0,
                grid=(grid,),
                in_specs=[
                    pl.BlockSpec((tm_rows, pack), lambda i: (i, 0)),   # indices
                    w_spec,                                            # codebook
                ],
                out_specs=pl.BlockSpec((tm_rows, out_w), lambda i: (i, 0)),
            ),
            compiler_params=pltpu.CompilerParams(
                dimension_semantics=("parallel",),
                vmem_limit_bytes=vmem_limit,
            ),
            cost_estimate=cost,
        )(idx2d, w_packed)

    try:
        # Codebook block index is constant across the grid: request a single
        # VMEM buffer (halves the resident codebook footprint).
        out = call(pl.BlockSpec((kp, out_w), lambda i: (0, 0),
                                pipeline_mode=pl.Buffered(1)))
    except Exception:
        # Older jax/Mosaic without single-buffer pipeline_mode support: pay the
        # extra codebook buffer (already accounted for in vmem_limit).
        out = call(pl.BlockSpec((kp, out_w), lambda i: (0, 0)))

    # (rows_total, pack*D) is exactly the row-major (m_pad, D) buffer; the
    # reshape is contiguous metadata only.  The [:M] slice exists only when M
    # was padded (costs at most one M*D copy).
    y = out.reshape(m_pad, D)
    if m_pad != M:
        y = y[:M]
    return y.reshape(*orig_shape, D)


# ---------------------------------------------------------------------------
# regime 2: large codebook stays in HBM, per-row DMA gather
# ---------------------------------------------------------------------------

_DMA_INFLIGHT = 8   # ring of outstanding row DMAs per grid step


def _dma_gather_kernel(idx_ref, w_hbm, o_ref, sems, *,
                       tile_rows: int, total_rows: int, num_codes: int):
    """Row gather through direct HBM->VMEM DMAs (codebook never leaves HBM).

    idx_ref : (M,) int32 in SMEM (scalar prefetch)
    w_hbm   : (K, D) codebook ref in HBM (memory_space=pl.ANY)
    o_ref   : (tile_rows, D) output block; rows are DMA'd straight into it, so
              there are no vector stores and the gather is bit-exact.
    sems    : (_DMA_INFLIGHT,) DMA semaphores (ring of outstanding copies)
    """
    base = pl.program_id(0) * tile_rows

    def start(r):
        g = jnp.minimum(base + r, total_rows - 1)        # clamp ragged-tile reads
        code = jnp.clip(idx_ref[g], 0, num_codes - 1)    # keep the HBM DMA in bounds
        pltpu.make_async_copy(w_hbm.at[pl.ds(code, 1), :],
                              o_ref.at[pl.ds(r, 1), :],
                              sems.at[r % _DMA_INFLIGHT]).start()

    def wait(r):
        pltpu.make_async_copy(w_hbm.at[pl.ds(0, 1), :],
                              o_ref.at[pl.ds(0, 1), :],
                              sems.at[r % _DMA_INFLIGHT]).wait()

    depth = min(_DMA_INFLIGHT, tile_rows)

    @pl.loop(0, depth)
    def _prime(r):
        start(r)

    @pl.loop(depth, tile_rows)
    def _steady(r):
        wait(r - depth)
        start(r)

    @pl.loop(tile_rows - depth, tile_rows)
    def _drain(r):
        wait(r)


def _dma_gather_forward(flat, weight, orig_shape, *, vmem_cap):
    K, D = weight.shape
    M = int(flat.shape[0])
    out_isize = jnp.dtype(weight.dtype).itemsize

    # Big row tiles amortize the ~0.35 us/grid-step overhead; output lane
    # density does not matter here (rows arrive by DMA, not vector stores).
    bytes_per_row = 2 * D * out_isize + 16
    rows_cap = max(8, min(512, ((vmem_cap // 4) // bytes_per_row) // 8 * 8))
    tm = _row_tile(M, rows_cap)
    grid = pl.cdiv(M, tm)

    vmem_limit = int(min(vmem_cap, max(32 << 20, tm * bytes_per_row + (4 << 20))))

    cost = pl.CostEstimate(
        flops=0,
        transcendentals=0,
        bytes_accessed=int(M * 4 + 2 * M * D * out_isize),
    )

    kernel = functools.partial(_dma_gather_kernel, tile_rows=tm,
                               total_rows=M, num_codes=K)

    # TODO(synk): for very hot duplicate indices, sort/coalesce on the host to
    # turn repeated rows into a single DMA + VMEM broadcast.
    out = pl.pallas_call(
        kernel,
        out_shape=jax.ShapeDtypeStruct((M, D), weight.dtype),
        grid_spec=pltpu.PrefetchScalarGridSpec(
            num_scalar_prefetch=1,                         # flat indices -> SMEM
            grid=(grid,),
            in_specs=[pl.BlockSpec(memory_space=pl.ANY)],  # codebook stays in HBM
            out_specs=pl.BlockSpec((tm, D), lambda i, idx: (i, 0)),
            scratch_shapes=[pltpu.SemaphoreType.DMA((_DMA_INFLIGHT,))],
        ),
        compiler_params=pltpu.CompilerParams(
            dimension_semantics=("parallel",),
            vmem_limit_bytes=vmem_limit,
        ),
        cost_estimate=cost,
    )(flat, weight)

    return out.reshape(*orig_shape, D)


# ---------------------------------------------------------------------------
# public forward (regime dispatch)
# ---------------------------------------------------------------------------

def embedding_ema_forward(indices: jax.Array, weight: jax.Array, *,
                          packed_weight: jax.Array = None,
                          compute_dtype=None,
                          max_rows: int = None,
                          dma_gather_min_codes: int = 2048,
                          dma_gather_min_row_bytes: int = 512) -> jax.Array:
    """Pallas TPU equivalent of EmbeddingEMA.forward (F.embedding row gather).

    packed_weight : optional result of pack_codebook(weight[, compute_dtype]);
        hoists the block-diagonal packing out of the per-call path (rebuild
        once per EMA weight update).  Ignored on the large-codebook DMA path.
    compute_dtype : dtype fed to the MXU on the resident path.  bf16 halves
        one-hot vreg/VMEM pressure and runs the MXU at native rate (the 0/1
        one-hot stays exact; only codebook values are rounded).  The default
        keeps the codebook dtype (f32 goes through Mosaic's multi-pass f32
        MXU emulation).  The DMA path is always a bit-exact gather.
    dma_gather_min_codes / dma_gather_min_row_bytes : dispatch thresholds for
        the HBM DMA row-gather regime.  On v5e (197 TF/s MXU) the one-hot
        matmul goes MXU-bound ~4.6x earlier; consider min_codes ~512-1024.
    """
    K, D = weight.shape
    orig_shape = tuple(indices.shape)
    flat = indices.reshape(-1).astype(jnp.int32)

    phys = _vmem_physical_bytes()
    # Generation-aware working budget: ~48 MiB on v7x (64 MiB physical VMEM),
    # ~96 MiB on v5e/v6e (128 MiB physical VMEM).
    vmem_cap = max(32 << 20, (phys * 3) // 4)

    out_isize = jnp.dtype(weight.dtype).itemsize

    if packed_weight is not None:
        cdt = jnp.dtype(packed_weight.dtype)
        pack = max(1, packed_weight.shape[0] // K)
        if tuple(packed_weight.shape) != (pack * K, pack * D):
            raise ValueError("packed_weight does not match pack_codebook(weight)")
    else:
        cdt = jnp.dtype(compute_dtype) if compute_dtype is not None \
            else jnp.dtype(weight.dtype)
        pack = _select_pack(K, D)

    # ---- regime dispatch ---------------------------------------------------
    resident_bytes = 2 * (pack * K) * (pack * D) * cdt.itemsize   # worst case 2 bufs
    row_bytes = D * out_isize
    use_dma = (resident_bytes > vmem_cap // 3) or (
        K > dma_gather_min_codes and row_bytes >= dma_gather_min_row_bytes)

    if use_dma:
        return _dma_gather_forward(flat, weight, orig_shape, vmem_cap=vmem_cap)

    return _onehot_gather_forward(
        flat, weight, packed_weight, orig_shape, pack=pack, cdt=cdt,
        phys_vmem=phys, vmem_cap=vmem_cap, max_rows=max_rows)


def make_embedding_ema_params(num_codebook: int, embed_dim: int, key):
    """Deterministic stand-in for nn.init.uniform_(weight, -1/K, 1/K)."""
    bound = 1.0 / num_codebook
    weight = jax.random.uniform(
        key, (num_codebook, embed_dim), dtype=jnp.float32,
        minval=-bound, maxval=bound)
    weight_avg = weight.copy()
    vq_count = jnp.zeros((num_codebook,), dtype=jnp.float32)
    return {"weight": weight, "weight_avg": weight_avg, "vq_count": vq_count}


if __name__ == "__main__":
    key = jax.random.PRNGKey(0)
    k_w, k_idx, k_wbig, k_idxbig = jax.random.split(key, 4)

    batch, seq = 2, 8

    # ---- small codebook: resident one-hot/MXU path (lane-packed output) ----
    num_codebook, embed_dim = 64, 32
    params = make_embedding_ema_params(num_codebook, embed_dim, k_w)
    indices = jax.random.randint(
        k_idx, (batch, seq), minval=0, maxval=num_codebook, dtype=jnp.int32)

    out = jax.block_until_ready(embedding_ema_forward(indices, params["weight"]))
    ref = jnp.take(params["weight"], indices, axis=0)
    assert out.shape == (batch, seq, embed_dim)
    assert jnp.allclose(out, ref, atol=1e-6), "resident path mismatch"

    # Pre-packed codebook (packing hoisted out of the per-forward path).
    packed = pack_codebook(params["weight"])
    out_pre = jax.block_until_ready(
        embedding_ema_forward(indices, params["weight"], packed_weight=packed))
    assert jnp.allclose(out_pre, ref, atol=1e-6), "pre-packed path mismatch"

    # bf16 MXU path (one-hot exact; codebook rounded to bf16).
    out_bf16 = jax.block_until_ready(
        embedding_ema_forward(indices, params["weight"],
                              compute_dtype=jnp.bfloat16))
    ref_bf16 = jnp.take(
        params["weight"].astype(jnp.bfloat16).astype(jnp.float32),
        indices, axis=0)
    assert jnp.allclose(out_bf16, ref_bf16, atol=1e-6), "bf16 path mismatch"

    # ---- large codebook: HBM-resident DMA row-gather path -------------------
    big_codes, big_dim = 4096, 128
    params_big = make_embedding_ema_params(big_codes, big_dim, k_wbig)
    idx_big = jax.random.randint(
        k_idxbig, (batch, seq), minval=0, maxval=big_codes, dtype=jnp.int32)
    out_big = jax.block_until_ready(
        embedding_ema_forward(idx_big, params_big["weight"]))
    ref_big = jnp.take(params_big["weight"], idx_big, axis=0)
    assert out_big.shape == (batch, seq, big_dim)
    assert jnp.allclose(out_big, ref_big, atol=1e-6), "dma gather path mismatch"

    print("KERNEL_OK")
</pallas_src>

<mosaic_0001>
module attributes {stable_mosaic.version = 11 : i64} {
  func.func @_onehot_gather_kernel(%arg0: i32, %arg1: memref<4x4xi32, #tpu.memory_space<vmem>>, %arg2: memref<256x128xf32, #tpu.memory_space<vmem>>, %arg3: memref<4x128xf32, #tpu.memory_space<vmem>>) attributes {dimension_semantics = [#tpu.dimension_semantics<parallel>], iteration_bounds = array<i64: 1>, scalar_prefetch = 0 : i64, scratch_operands = 0 : i64, tpu.core_type = #tpu.core_type<tc>, window_params = [{transform_indices = @transform_0, window_bounds = array<i64: 4, 4>}, {pipeline_mode = #tpu.pipeline_mode<synchronous>, transform_indices = @transform_1, window_bounds = array<i64: 256, 128>}, {transform_indices = @transform_2, window_bounds = array<i64: 4, 128>}]} {
    %c0 = arith.constant 0 : index
    %c0_0 = arith.constant 0 : index
    %0 = vector.load %arg1[%c0, %c0_0] : memref<4x4xi32, #tpu.memory_space<vmem>>, vector<4x4xi32>
    %1 = tpu.iota {dimensions = array<i32: 1>} : vector<4x256xi32>
    %2 = vector.extract_strided_slice %0 {offsets = [0, 0], sizes = [4, 1], strides = [1, 1]} : vector<4x4xi32> to vector<4x1xi32>
    %c64_i32 = arith.constant 64 : i32
    %3 = vector.broadcast %c64_i32 : i32 to vector<4x256xi32>
    %4 = arith.cmpi sge, %1, %3 : vector<4x256xi32>
    %5 = vector.extract_strided_slice %0 {offsets = [0, 1], sizes = [4, 1], strides = [1, 1]} : vector<4x4xi32> to vector<4x1xi32>
    %c64_i32_1 = arith.constant 64 : i32
    %6 = vector.broadcast %c64_i32_1 : i32 to vector<4x1xi32>
    %7 = arith.addi %5, %6 : vector<4x1xi32>
    %8 = vector.shape_cast %7 : vector<4x1xi32> to vector<4x1xi32>
    %9 = vector.broadcast %8 : vector<4x1xi32> to vector<4x256xi32>
    %10 = vector.shape_cast %2 : vector<4x1xi32> to vector<4x1xi32>
    %11 = vector.broadcast %10 : vector<4x1xi32> to vector<4x256xi32>
    %12 = arith.select %4, %9, %11 : vector<4x256xi1>, vector<4x256xi32>
    %c128_i32 = arith.constant 128 : i32
    %13 = vector.broadcast %c128_i32 : i32 to vector<4x256xi32>
    %14 = arith.cmpi sge, %1, %13 : vector<4x256xi32>
    %15 = vector.extract_strided_slice %0 {offsets = [0, 2], sizes = [4, 1], strides = [1, 1]} : vector<4x4xi32> to vector<4x1xi32>
    %c128_i32_2 = arith.constant 128 : i32
    %16 = vector.broadcast %c128_i32_2 : i32 to vector<4x1xi32>
    %17 = arith.addi %15, %16 : vector<4x1xi32>
    %18 = vector.shape_cast %17 : vector<4x1xi32> to vector<4x1xi32>
    %19 = vector.broadcast %18 : vector<4x1xi32> to vector<4x256xi32>
    %20 = arith.select %14, %19, %12 : vector<4x256xi1>, vector<4x256xi32>
    %c192_i32 = arith.constant 192 : i32
    %21 = vector.broadcast %c192_i32 : i32 to vector<4x256xi32>
    %22 = arith.cmpi sge, %1, %21 : vector<4x256xi32>
    %23 = vector.extract_strided_slice %0 {offsets = [0, 3], sizes = [4, 1], strides = [1, 1]} : vector<4x4xi32> to vector<4x1xi32>
    %c192_i32_3 = arith.constant 192 : i32
    %24 = vector.broadcast %c192_i32_3 : i32 to vector<4x1xi32>
    %25 = arith.addi %23, %24 : vector<4x1xi32>
    %26 = vector.shape_cast %25 : vector<4x1xi32> to vector<4x1xi32>
    %27 = vector.broadcast %26 : vector<4x1xi32> to vector<4x256xi32>
    %28 = arith.select %22, %27, %20 : vector<4x256xi1>, vector<4x256xi32>
    %29 = arith.cmpi eq, %1, %28 : vector<4x256xi32>
    %30 = arith.extui %29 : vector<4x256xi1> to vector<4x256xi32>
    %31 = arith.sitofp %30 : vector<4x256xi32> to vector<4x256xf32>
    %c0_4 = arith.constant 0 : index
    %c0_5 = arith.constant 0 : index
    %32 = vector.load %arg2[%c0_4, %c0_5] : memref<256x128xf32, #tpu.memory_space<vmem>>, vector<256x128xf32>
    %cst = arith.constant dense<0.000000e+00> : vector<4x128xf32>
    %33 = tpu.matmul %31, %32, %cst {dimension_numbers = #tpu.dot_dimension_numbers<[1], [0], [0], [1], [0, 0, 1, 1], [], []>} : vector<4x256xf32>, vector<256x128xf32>, vector<4x128xf32> -> vector<4x128xf32>
    %c0_6 = arith.constant 0 : index
    %c0_7 = arith.constant 0 : index
    %34 = vector.load %arg3[%c0_6, %c0_7] : memref<4x128xf32, #tpu.memory_space<vmem>>, vector<4x128xf32>
    tpu.vector_store %arg3[%c0_6, %c0_7], %33 {strides = array<i32>} : memref<4x128xf32, #tpu.memory_space<vmem>>, vector<4x128xf32>,
    return
  }
  func.func @transform_0(%arg0: i32) -> (i32, i32) {
    %c0_i32 = arith.constant 0 : i32
    %c0_i32_0 = arith.constant 0 : i32
    return %arg0, %c0_i32 : i32, i32
  }
  func.func @transform_1(%arg0: i32) -> (i32, i32) {
    %c0_i32 = arith.constant 0 : i32
    %c0_i32_0 = arith.constant 0 : i32
    %c0_i32_1 = arith.constant 0 : i32
    return %c0_i32, %c0_i32_0 : i32, i32
  }
  func.func @transform_2(%arg0: i32) -> (i32, i32) {
    %c0_i32 = arith.constant 0 : i32
    %c0_i32_0 = arith.constant 0 : i32
    return %arg0, %c0_i32 : i32, i32
  }
}

module attributes {stable_mosaic.version = 11 : i64} {
  func.func @_onehot_gather_kernel(%arg0: i32, %arg1: memref<4x4xi32, #tpu.memory_space<vmem>>, %arg2: memref<256x128xf32, #tpu.memory_space<vmem>>, %arg3: memref<4x128xf32, #tpu.memory_space<vmem>>) attributes {dimension_semantics = [#tpu.dimension_semantics<parallel>], iteration_bounds = array<i64: 1>, scalar_prefetch = 0 : i64, scratch_operands = 0 : i64, tpu.core_type = #tpu.core_type<tc>, window_params = [{transform_indices = @transform_0, window_bounds = array<i64: 4, 4>}, {pipeline_mode = #tpu.pipeline_mode<synchronous>, transform_indices = @transform_1, window_bounds = array<i64: 256, 128>}, {transform_indices = @transform_2, window_bounds = array<i64: 4, 128>}]} {
    %c0 = arith.constant 0 : index
    %c0_0 = arith.constant 0 : index
    %0 = vector.load %arg1[%c0, %c0_0] : memref<4x4xi32, #tpu.memory_space<vmem>>, vector<4x4xi32>
    %1 = tpu.iota {dimensions = array<i32: 1>} : vector<4x256xi32>
    %2 = vector.extract_strided_slice %0 {offsets = [0, 0], sizes = [4, 1], strides = [1, 1]} : vector<4x4xi32> to vector<4x1xi32>
    %c64_i32 = arith.constant 64 : i32
    %3 = vector.broadcast %c64_i32 : i32 to vector<4x256xi32>
    %4 = arith.cmpi sge, %1, %3 : vector<4x256xi32>
    %5 = vector.extract_strided_slice %0 {offsets = [0, 1], sizes = [4, 1], strides = [1, 1]} : vector<4x4xi32> to vector<4x1xi32>
    %c64_i32_1 = arith.constant 64 : i32
    %6 = vector.broadcast %c64_i32_1 : i32 to vector<4x1xi32>
    %7 = arith.addi %5, %6 : vector<4x1xi32>
    %8 = vector.shape_cast %7 : vector<4x1xi32> to vector<4x1xi32>
    %9 = vector.broadcast %8 : vector<4x1xi32> to vector<4x256xi32>
    %10 = vector.shape_cast %2 : vector<4x1xi32> to vector<4x1xi32>
    %11 = vector.broadcast %10 : vector<4x1xi32> to vector<4x256xi32>
    %12 = arith.select %4, %9, %11 : vector<4x256xi1>, vector<4x256xi32>
    %c128_i32 = arith.constant 128 : i32
    %13 = vector.broadcast %c128_i32 : i32 to vector<4x256xi32>
    %14 = arith.cmpi sge, %1, %13 : vector<4x256xi32>
    %15 = vector.extract_strided_slice %0 {offsets = [0, 2], sizes = [4, 1], strides = [1, 1]} : vector<4x4xi32> to vector<4x1xi32>
    %c128_i32_2 = arith.constant 128 : i32
    %16 = vector.broadcast %c128_i32_2 : i32 to vector<4x1xi32>
    %17 = arith.addi %15, %16 : vector<4x1xi32>
    %18 = vector.shape_cast %17 : vector<4x1xi32> to vector<4x1xi32>
    %19 = vector.broadcast %18 : vector<4x1xi32> to vector<4x256xi32>
    %20 = arith.select %14, %19, %12 : vector<4x256xi1>, vector<4x256xi32>
    %c192_i32 = arith.constant 192 : i32
    %21 = vector.broadcast %c192_i32 : i32 to vector<4x256xi32>
    %22 = arith.cmpi sge, %1, %21 : vector<4x256xi32>
    %23 = vector.extract_strided_slice %0 {offsets = [0, 3], sizes = [4, 1], strides = [1, 1]} : vector<4x4xi32> to vector<4x1xi32>
    %c192_i32_3 = arith.constant 192 : i32
    %24 = vector.broadcast %c192_i32_3 : i32 to vector<4x1xi32>
    %25 = arith.addi %23, %24 : vector<4x1xi32>
    %26 = vector.shape_cast %25 : vector<4x1xi32> to vector<4x1xi32>
    %27 = vector.broadcast %26 : vector<4x1xi32> to vector<4x256xi32>
    %28 = arith.select %22, %27, %20 : vector<4x256xi1>, vector<4x256xi32>
    %29 = arith.cmpi eq, %1, %28 : vector<4x256xi32>
    %30 = arith.extui %29 : vector<4x256xi1> to vector<4x256xi32>
    %31 = arith.sitofp %30 : vector<4x256xi32> to vector<4x256xf32>
    %c0_4 = arith.constant 0 : index
    %c0_5 = arith.constant 0 : index
    %32 = vector.load %arg2[%c0_4, %c0_5] : memref<256x128xf32, #tpu.memory_space<vmem>>, vector<256x128xf32>
    %cst = arith.constant dense<0.000000e+00> : vector<4x128xf32>
    %33 = tpu.matmul %31, %32, %cst {dimension_numbers = #tpu.dot_dimension_numbers<[1], [0], [0], [1], [0, 0, 1, 1], [], []>} : vector<4x256xf32>, vector<256x128xf32>, vector<4x128xf32> -> vector<4x128xf32>
    %c0_6 = arith.constant 0 : index
    %c0_7 = arith.constant 0 : index
    %34 = vector.load %arg3[%c0_6, %c0_7] : memref<4x128xf32, #tpu.memory_space<vmem>>, vector<4x128xf32>
    tpu.vector_store %arg3[%c0_6, %c0_7], %33 {strides = array<i32>} : memref<4x128xf32, #tpu.memory_space<vmem>>, vector<4x128xf32>,
    return
  }
  func.func @transform_0(%arg0: i32) -> (i32, i32) {
    %c0_i32 = arith.constant 0 : i32
    %c0_i32_0 = arith.constant 0 : i32
    return %arg0, %c0_i32 : i32, i32
  }
  func.func @transform_1(%arg0: i32) -> (i32, i32) {
    %c0_i32 = arith.constant 0 : i32
    %c0_i32_0 = arith.constant 0 : i32
    %c0_i32_1 = arith.constant 0 : i32
    return %c0_i32, %c0_i32_0 : i32, i32
  }
  func.func @transform_2(%arg0: i32) -> (i32, i32) {
    %c0_i32 = arith.constant 0 : i32
    %c0_i32_0 = arith.constant 0 : i32
    return %arg0, %c0_i32 : i32, i32
  }
}

</mosaic_0001>

<bundles_post_ra>
// kernel: tpu_custom_call.1
= control target key start
LH: loop header
LB: loop body
LE: loop exit
PB: predicated region body
PF: predicated region fallthrough
CT: control target
= control target key end

     0   :  { %7 = vsyncpa [#allocation3], 0  ;;  %s419_s0 = inlined_call_operand.hbm [shape: s32[4,4], index: 0, kind: input, shape index: {}]   ;;  %s420_s1 = inlined_call_operand.hbm [shape: f32[256,128], index: 1, kind: input, shape index: {}]   ;;  %s421_s2 = inlined_call_operand.hbm [shape: f32[4,128], index: 2, kind: output, shape index: {}]  }
   0x1   :  { %8 = vsyncpa [#allocation6], 0 }
   0x2   :  { %9 = vsyncpa [#allocation4], 0  ;;  %s351_s9 = smov [#allocation2]   ;;  %s352_s11 = smov [#allocation5]  }
   0x3   :  { %s16_s10 = sshll.u32 %s351_s9, 4  ;;  %s25_s12 = sshll.u32 %s352_s11, 4  ;;  %s17_s10 = int_to_ptr.vmem [resolvable:$true] %s16_s10  ;;  %s376_s12 = int_to_ptr.vmem [resolvable:$true] %s25_s12 }
   0x4   :  { %s279_s15 = scalar_lea.hbm %s419_s0, 64 }
   0x5   :  { %p280_p0 = scmp.ne.s32.totalorder %s419_s0, %s279_s15  ;;  %p283_p1 = scmp.lt.u32.totalorder %s279_s15, %s419_s0 }
   0x7   :  { %p285_p2 = pnand %p283_p1, %p280_p0 }
   0x9   :  { %288 = shalt.err (!%p285_p2)
}
   0xa   :  { %s289_s20 = scalar_lea.vmem %s17_s10, 64  ;;  %p294_p4 = scmp.lt.s32.totalorder %s17_s10, %s17_s10 }
   0xb   :  { %p290_p3 = scmp.ne.s32.totalorder %s17_s10, %s289_s20  ;;  %p295_p5 = scmp.lt.s32.totalorder %s289_s20, %s289_s20 }
   0xd   :  { %p296_p6 = por %p295_p5, %p294_p4 }
   0xf   :  { %p297_p7 = pnand %p296_p6, %p290_p3 }
  0x11   :  { %300 = shalt.err (!%p297_p7)
}
  0x12   :  { %19 = dma.hbm_to_vmem [thread:$0]  %s419_s0, 64, %s17_s10, [#allocation3]  }
  0x13   :  { %s301_s25 = scalar_lea.hbm %s420_s1, 4096 }
  0x14   :  { %p302_p8 = scmp.ne.s32.totalorder %s420_s1, %s301_s25  ;;  %p305_p9 = scmp.lt.u32.totalorder %s301_s25, %s420_s1 }
  0x16   :  { %p307_p10 = pnand %p305_p9, %p302_p8 }
  0x18   :  { %310 = shalt.err (!%p307_p10)
}
  0x19   :  { %s311_s30 = scalar_lea.vmem %s376_s12, 4096  ;;  %p316_p12 = scmp.lt.s32.totalorder %s376_s12, %s376_s12 }
  0x1a   :  { %p312_p11 = scmp.ne.s32.totalorder %s376_s12, %s311_s30  ;;  %p317_p13 = scmp.lt.s32.totalorder %s311_s30, %s311_s30 }
  0x1c   :  { %p318_p0 = por %p317_p13, %p316_p12 }
  0x1e   :  { %p319_p1 = pnand %p318_p0, %p312_p11 }
  0x20   :  { %322 = shalt.err (!%p319_p1)
}
  0x21   :  { %s353_s0 = smov 128   ;;  %s354_s3 = smov 8  }
  0x22   :  { %31 = dma.hbm_to_vmem [thread:$0]  %s420_s1, 4096, %s376_s12, [#allocation6], %s353_s0, %s353_s0, %s354_s3  }
  0x23   :  { %345 = dma.done.wait [#allocation3], 64  }
  0x24   :  { %346 = vsyncadd [#allocation3], 4294967232 }
  0x25   :  { %347 = dma.done.wait [#allocation6], 4096  }
  0x26   :  { %348 = vsyncadd [#allocation6], 4294963200  ;;  %v355_v0 = vmov 2   ;;  %v356_v1 = vmov 1   ;;  %v38_v2 = vld [vmem:[#allocation2] sm:$0xf]  ;;  %v39_v56 = vlaneseq }
  0x27   :  { %275 = vset.pattern.permute.xlu0 %v355_v0  ;;  %277 = vset.pattern.permute.xlu1 %v356_v1  ;;  %v91_v3 = vld [vmem:[#allocation5 + $0x80] sm:$0xff]  ;;  %v92_v4 = vld [vmem:[#allocation5 + $0x88] sm:$0xff]  ;;  %v55_v5 = vadd.s32 128, %v38_v2  ;;  %v44_v6 = vadd.s32 64, %v38_v2  ;;  %v93_v10 = vld [vmem:[#allocation5 + $0x90] sm:$0xff]  ;;  %v63_v18 = vadd.s32 192, %v38_v2 }
  0x28   :  { %v233_v7 = vpack.c.bf16 %v92_v4, %v91_v3  ;;  %v75_v8 = vld [vmem:[#allocation5] sm:$0xff]  ;;  %v76_v9 = vld [vmem:[#allocation5 + $0x8] sm:$0xff]  ;;  %v94_v12 = vld [vmem:[#allocation5 + $0x98] sm:$0xff]  ;;  %v357_v23 = vmov 3   ;;  %v358_v24 = vmov 0   ;;  %v40_v57 = vand.u32 127, %v39_v56 }
  0x29   :  { %v235_v11 = vpack.c.bf16 %v76_v9, %v75_v8  ;;  %v77_v13 = vld [vmem:[#allocation5 + $0x10] sm:$0xff]  ;;  %v78_v14 = vld [vmem:[#allocation5 + $0x18] sm:$0xff]  ;;  %57 = vperm.xlu0 %275, %v55_v5   ;;  %46 = vperm.xlu1 %277, %v44_v6   ;;  %v237_v15 = vpack.c.bf16 %v94_v12, %v93_v10  ;;  %v95_v16 = vld [vmem:[#allocation5 + $0xa0] sm:$0xff]  ;;  %v359_v1 = vmov 1.0   ;;  %s360_s1 = smov [#allocation7]  }
  0x2a   :  { %v96_v17 = vld [vmem:[#allocation5 + $0xa8] sm:$0xff]  ;;  %234 = vmatprep.subr.bf16.mxu0 %v233_v7  ;;  %v239_v19 = vpack.c.bf16 %v78_v14, %v77_v13  ;;  %v79_v21 = vld [vmem:[#allocation5 + $0x20] sm:$0xff]  ;;  %v97_v25 = vld [vmem:[#allocation5 + $0xb0] sm:$0xff]  ;;  %v41_v58 = vadd.s32 128, %v40_v57  ;;  %vm42_vm0 = vcmp.ge.s32.totalorder %v40_v57, 64  ;;  %s184_s6 = sshll.u32 %s360_s1, 4  ;;  %s185_s6 = int_to_ptr.vmem [resolvable:$true] %s184_s6 }
  0x2b   :  { %236 = vmatpush3.bf16.msra.mxu0 %v235_v11  ;;  %v241_v20 = vpack.c.bf16 %v96_v17, %v95_v16  ;;  %v80_v22 = vld [vmem:[#allocation5 + $0x28] sm:$0xff]  ;;  %v98_v26 = vld [vmem:[#allocation5 + $0xb8] sm:$0xff]  ;;  %v81_v29 = vld [vmem:[#allocation5 + $0x30] sm:$0xff]  ;;  %s323_s7 = scalar_lea.vmem %s185_s6, 64  ;;  %p328_p3 = scmp.lt.s32.totalorder %s185_s6, %s185_s6 }
  0x2c   :  { %238 = vmatprep.subr.bf16.mxu0 %v237_v15  ;;  %v243_v27 = vpack.c.bf16 %v80_v22, %v79_v21  ;;  %v245_v28 = vpack.c.bf16 %v98_v26, %v97_v25  ;;  %v82_v30 = vld [vmem:[#allocation5 + $0x38] sm:$0xff]  ;;  %v99_v31 = vld [vmem:[#allocation5 + $0xc0] sm:$0xff]  ;;  %v100_v32 = vld [vmem:[#allocation5 + $0xc8] sm:$0xff]  ;;  %vm62_vm1 = vcmp.ge.s32.totalorder %v41_v58, 192  ;;  %p324_p2 = scmp.ne.s32.totalorder %s185_s6, %s323_s7  ;;  %p329_p4 = scmp.lt.s32.totalorder %s323_s7, %s323_s7 }
  0x2d   :  { %276 = vset.pattern.permute.xlu0 %v357_v23  ;;  %278 = vset.pattern.permute.xlu1 %v358_v24  ;;  %v247_v33 = vpack.c.bf16 %v82_v30, %v81_v29  ;;  %v249_v34 = vpack.c.bf16 %v100_v32, %v99_v31  ;;  %v83_v35 = vld [vmem:[#allocation5 + $0x40] sm:$0xff]  ;;  %v84_v36 = vld [vmem:[#allocation5 + $0x48] sm:$0xff]  ;;  %v101_v37 = vld [vmem:[#allocation5 + $0xd0] sm:$0xff] }
  0x2e   :  { %65 = vperm.xlu0 %276, %v63_v18   ;;  %49 = vperm.xlu1 %278, %v38_v2   ;;  %v102_v38 = vld [vmem:[#allocation5 + $0xd8] sm:$0xff]  ;;  %v251_v39 = vpack.c.bf16 %v84_v36, %v83_v35  ;;  %v85_v41 = vld [vmem:[#allocation5 + $0x50] sm:$0xff]  ;;  %v103_v43 = vld [vmem:[#allocation5 + $0xe0] sm:$0xff]  ;;  %p330_p5 = por %p329_p4, %p328_p3 }
  0x2f   :  { %240 = vmatpush3.bf16.msra.mxu0 %v239_v19  ;;  %v253_v40 = vpack.c.bf16 %v102_v38, %v101_v37  ;;  %v86_v42 = vld [vmem:[#allocation5 + $0x58] sm:$0xff]  ;;  %v104_v44 = vld [vmem:[#allocation5 + $0xe8] sm:$0xff]  ;;  %v87_v47 = vld [vmem:[#allocation5 + $0x60] sm:$0xff] }
  0x30   :  { %242 = vmatprep.subr.bf16.mxu0 %v241_v20  ;;  %v255_v45 = vpack.c.bf16 %v86_v42, %v85_v41  ;;  %v257_v46 = vpack.c.bf16 %v104_v44, %v103_v43  ;;  %v88_v48 = vld [vmem:[#allocation5 + $0x68] sm:$0xff]  ;;  %v105_v49 = vld [vmem:[#allocation5 + $0xf0] sm:$0xff]  ;;  %v106_v50 = vld [vmem:[#allocation5 + $0xf8] sm:$0xff]  ;;  %p331_p6 = pnand %p330_p5, %p324_p2 }
  0x31   :  { %v259_v51 = vpack.c.bf16 %v88_v48, %v87_v47  ;;  %v261_v52 = vpack.c.bf16 %v106_v50, %v105_v49  ;;  %v89_v53 = vld [vmem:[#allocation5 + $0x70] sm:$0xff]  ;;  %v90_v54 = vld [vmem:[#allocation5 + $0x78] sm:$0xff] }
  0x32   :  { %v263_v55 = vpack.c.bf16 %v90_v54, %v89_v53 }
  0x33   :  { %244 = vmatpush3.bf16.msra.mxu0 %v243_v27 }
  0x34   :  { %246 = vmatprep.subr.bf16.mxu0 %v245_v28 }
  0x37   :  { %248 = vmatpush3.bf16.msra.mxu0 %v247_v33 }
  0x38   :  { %250 = vmatprep.subr.bf16.mxu0 %v249_v34 }
  0x3b   :  { %252 = vmatpush3.bf16.msra.mxu0 %v251_v39 }
  0x3c   :  { %254 = vmatprep.subr.bf16.mxu0 %v253_v40 }
  0x3f   :  { %256 = vmatpush3.bf16.msra.mxu0 %v255_v45 }
  0x40   :  { %258 = vmatprep.subr.bf16.mxu0 %v257_v46 }
  0x43   :  { %260 = vmatpush3.bf16.msra.mxu0 %v259_v51 }
  0x44   :  { %262 = vmatprep.subr.bf16.mxu0 %v261_v52 }
  0x47   :  { %264 = vmatpush3.bf16.msra.mxu0 %v263_v55 }
  0xa8   :  { %v58_v59 = vpop.permute.xlu0 %57  ;;  %v47_v60 = vpop.permute.xlu1 %46 }
  0xad   :  { %v66_v61 = vpop.permute.xlu0 %65  ;;  %v50_v62 = vpop.permute.xlu1 %49 }
  0xae   :  { %v51_v63 = vsel %vm42_vm0, %v47_v60, %v50_v62  ;;  %v68_v0 = vsel %vm62_vm1, %v66_v61, %v58_v59 }
  0xaf   :  { %vm69_vm2 = vcmp.eq.s32.totalorder %v40_v57, %v51_v63  ;;  %vm70_vm3 = vcmp.eq.s32.totalorder %v41_v58, %v68_v0 }
  0xb0   :  { %196 = vmatprep.mubr.msk.f32.mxu0 %vm70_vm3, %v359_v1 }
  0xb1   :  { %197 = vmatmul.mubr.msk.f32.vlgmr.msra.gmra.mrb[0].mxu0 %vm69_vm2, %v359_v1 }
 0x184   :  { %v230_v2 = vpop.f32.mrb[0].mxu0 }
 0x185   :  { %v231_v3 = vpop.f32.mrb[1].mxu0 }
 0x186   :  { %v232_v4 = vadd.f32 %v231_v3, %v230_v2 }
 0x188   :  { %177 = vst [vmem:[#allocation7] sm:$0xf] %v232_v4 }
 0x189   :  { %334 = shalt.err (!%p331_p6)
}
 0x18a   :  { %s335_s10 = scalar_lea.hbm %s421_s2, 64 }
 0x18b   :  { %p336_p7 = scmp.ne.s32.totalorder %s421_s2, %s335_s10  ;;  %p339_p8 = scmp.lt.u32.totalorder %s335_s10, %s421_s2 }
 0x18d   :  { %p341_p9 = pnand %p339_p8, %p336_p7 }
 0x18f   :  { %344 = shalt.err (!%p341_p9)
}
 0x190   :  { %187 = dma.vmem_to_hbm [thread:$0]  %s185_s6, 64, %s421_s2, [#allocation4]  }
 0x191   :  { %349 = dma.done.wait [#allocation4], 64  }
 0x192   :  { %350 = vsyncadd [#allocation4], 4294967232 }
 0x193   :  { %191 = vsyncpa [#allocation3], 1 }
 0x194   :  { %192 = vsyncpa [#allocation6], 1 }
 0x195   :  { %193 = vsyncpa [#allocation4], 1 }

// kernel: tpu_custom_call.1
= control target key start
LH: loop header
LB: loop body
LE: loop exit
PB: predicated region body
PF: predicated region fallthrough
CT: control target
= control target key end

     0   :  { %7 = vsyncpa [#allocation3], 0  ;;  %s419_s0 = inlined_call_operand.hbm [shape: s32[4,4], index: 0, kind: input, shape index: {}]   ;;  %s420_s1 = inlined_call_operand.hbm [shape: f32[256,128], index: 1, kind: input, shape index: {}]   ;;  %s421_s2 = inlined_call_operand.hbm [shape: f32[4,128], index: 2, kind: output, shape index: {}]  }
   0x1   :  { %8 = vsyncpa [#allocation6], 0 }
   0x2   :  { %9 = vsyncpa [#allocation4], 0  ;;  %s351_s9 = smov [#allocation2]   ;;  %s352_s11 = smov [#allocation5]  }
   0x3   :  { %s16_s10 = sshll.u32 %s351_s9, 4  ;;  %s25_s12 = sshll.u32 %s352_s11, 4  ;;  %s17_s10 = int_to_ptr.vmem [resolvable:$true] %s16_s10  ;;  %s376_s12 = int_to_ptr.vmem [resolvable:$true] %s25_s12 }
   0x4   :  { %s279_s15 = scalar_lea.hbm %s419_s0, 64 }
   0x5   :  { %p280_p0 = scmp.ne.s32.totalorder %s419_s0, %s279_s15  ;;  %p283_p1 = scmp.lt.u32.totalorder %s279_s15, %s419_s0 }
   0x7   :  { %p285_p2 = pnand %p283_p1, %p280_p0 }
   0x9   :  { %288 = shalt.err (!%p285_p2)
}
   0xa   :  { %s289_s20 = scalar_lea.vmem %s17_s10, 64  ;;  %p294_p4 = scmp.lt.s32.totalorder %s17_s10, %s17_s10 }
   0xb   :  { %p290_p3 = scmp.ne.s32.totalorder %s17_s10, %s289_s20  ;;  %p295_p5 = scmp.lt.s32.totalorder %s289_s20, %s289_s20 }
   0xd   :  { %p296_p6 = por %p295_p5, %p294_p4 }
   0xf   :  { %p297_p7 = pnand %p296_p6, %p290_p3 }
  0x11   :  { %300 = shalt.err (!%p297_p7)
}
  0x12   :  { %19 = dma.hbm_to_vmem [thread:$0]  %s419_s0, 64, %s17_s10, [#allocation3]  }
  0x13   :  { %s301_s25 = scalar_lea.hbm %s420_s1, 4096 }
  0x14   :  { %p302_p8 = scmp.ne.s32.totalorder %s420_s1, %s301_s25  ;;  %p305_p9 = scmp.lt.u32.totalorder %s301_s25, %s420_s1 }
  0x16   :  { %p307_p10 = pnand %p305_p9, %p302_p8 }
  0x18   :  { %310 = shalt.err (!%p307_p10)
}
  0x19   :  { %s311_s30 = scalar_lea.vmem %s376_s12, 4096  ;;  %p316_p12 = scmp.lt.s32.totalorder %s376_s12, %s376_s12 }
  0x1a   :  { %p312_p11 = scmp.ne.s32.totalorder %s376_s12, %s311_s30  ;;  %p317_p13 = scmp.lt.s32.totalorder %s311_s30, %s311_s30 }
  0x1c   :  { %p318_p0 = por %p317_p13, %p316_p12 }
  0x1e   :  { %p319_p1 = pnand %p318_p0, %p312_p11 }
  0x20   :  { %322 = shalt.err (!%p319_p1)
}
  0x21   :  { %s353_s0 = smov 128   ;;  %s354_s3 = smov 8  }
  0x22   :  { %31 = dma.hbm_to_vmem [thread:$0]  %s420_s1, 4096, %s376_s12, [#allocation6], %s353_s0, %s353_s0, %s354_s3  }
  0x23   :  { %345 = dma.done.wait [#allocation3], 64  }
  0x24   :  { %346 = vsyncadd [#allocation3], 4294967232 }
  0x25   :  { %347 = dma.done.wait [#allocation6], 4096  }
  0x26   :  { %348 = vsyncadd [#allocation6], 4294963200  ;;  %v355_v0 = vmov 2   ;;  %v356_v1 = vmov 1   ;;  %v38_v2 = vld [vmem:[#allocation2] sm:$0xf]  ;;  %v39_v56 = vlaneseq }
  0x27   :  { %275 = vset.pattern.permute.xlu0 %v355_v0  ;;  %277 = vset.pattern.permute.xlu1 %v356_v1  ;;  %v91_v3 = vld [vmem:[#allocation5 + $0x80] sm:$0xff]  ;;  %v92_v4 = vld [vmem:[#allocation5 + $0x88] sm:$0xff]  ;;  %v55_v5 = vadd.s32 128, %v38_v2  ;;  %v44_v6 = vadd.s32 64, %v38_v2  ;;  %v93_v10 = vld [vmem:[#allocation5 + $0x90] sm:$0xff]  ;;  %v63_v18 = vadd.s32 192, %v38_v2 }
  0x28   :  { %v233_v7 = vpack.c.bf16 %v92_v4, %v91_v3  ;;  %v75_v8 = vld [vmem:[#allocation5] sm:$0xff]  ;;  %v76_v9 = vld [vmem:[#allocation5 + $0x8] sm:$0xff]  ;;  %v94_v12 = vld [vmem:[#allocation5 + $0x98] sm:$0xff]  ;;  %v357_v23 = vmov 3   ;;  %v358_v24 = vmov 0   ;;  %v40_v57 = vand.u32 127, %v39_v56 }
  0x29   :  { %v235_v11 = vpack.c.bf16 %v76_v9, %v75_v8  ;;  %v77_v13 = vld [vmem:[#allocation5 + $0x10] sm:$0xff]  ;;  %v78_v14 = vld [vmem:[#allocation5 + $0x18] sm:$0xff]  ;;  %57 = vperm.xlu0 %275, %v55_v5   ;;  %46 = vperm.xlu1 %277, %v44_v6   ;;  %v237_v15 = vpack.c.bf16 %v94_v12, %v93_v10  ;;  %v95_v16 = vld [vmem:[#allocation5 + $0xa0] sm:$0xff]  ;;  %v359_v1 = vmov 1.0   ;;  %s360_s1 = smov [#allocation7]  }
  0x2a   :  { %v96_v17 = vld [vmem:[#allocation5 + $0xa8] sm:$0xff]  ;;  %234 = vmatprep.subr.bf16.mxu0 %v233_v7  ;;  %v239_v19 = vpack.c.bf16 %v78_v14, %v77_v13  ;;  %v79_v21 = vld [vmem:[#allocation5 + $0x20] sm:$0xff]  ;;  %v97_v25 = vld [vmem:[#allocation5 + $0xb0] sm:$0xff]  ;;  %v41_v58 = vadd.s32 128, %v40_v57  ;;  %vm42_vm0 = vcmp.ge.s32.totalorder %v40_v57, 64  ;;  %s184_s6 = sshll.u32 %s360_s1, 4  ;;  %s185_s6 = int_to_ptr.vmem [resolvable:$true] %s184_s6 }
  0x2b   :  { %236 = vmatpush3.bf16.msra.mxu0 %v235_v11  ;;  %v241_v20 = vpack.c.bf16 %v96_v17, %v95_v16  ;;  %v80_v22 = vld [vmem:[#allocation5 + $0x28] sm:$0xff]  ;;  %v98_v26 = vld [vmem:[#allocation5 + $0xb8] sm:$0xff]  ;;  %v81_v29 = vld [vmem:[#allocation5 + $0x30] sm:$0xff]  ;;  %s323_s7 = scalar_lea.vmem %s185_s6, 64  ;;  %p328_p3 = scmp.lt.s32.totalorder %s185_s6, %s185_s6 }
  0x2c   :  { %238 = vmatprep.subr.bf16.mxu0 %v237_v15  ;;  %v243_v27 = vpack.c.bf16 %v80_v22, %v79_v21  ;;  %v245_v28 = vpack.c.bf16 %v98_v26, %v97_v25  ;;  %v82_v30 = vld [vmem:[#allocation5 + $0x38] sm:$0xff]  ;;  %v99_v31 = vld [vmem:[#allocation5 + $0xc0] sm:$0xff]  ;;  %v100_v32 = vld [vmem:[#allocation5 + $0xc8] sm:$0xff]  ;;  %vm62_vm1 = vcmp.ge.s32.totalorder %v41_v58, 192  ;;  %p324_p2 = scmp.ne.s32.totalorder %s185_s6, %s323_s7  ;;  %p329_p4 = scmp.lt.s32.totalorder %s323_s7, %s323_s7 }
  0x2d   :  { %276 = vset.pattern.permute.xlu0 %v357_v23  ;;  %278 = vset.pattern.permute.xlu1 %v358_v24  ;;  %v247_v33 = vpack.c.bf16 %v82_v30, %v81_v29  ;;  %v249_v34 = vpack.c.bf16 %v100_v32, %v99_v31  ;;  %v83_v35 = vld [vmem:[#allocation5 + $0x40] sm:$0xff]  ;;  %v84_v36 = vld [vmem:[#allocation5 + $0x48] sm:$0xff]  ;;  %v101_v37 = vld [vmem:[#allocation5 + $0xd0] sm:$0xff] }
  0x2e   :  { %65 = vperm.xlu0 %276, %v63_v18   ;;  %49 = vperm.xlu1 %278, %v38_v2   ;;  %v102_v38 = vld [vmem:[#allocation5 + $0xd8] sm:$0xff]  ;;  %v251_v39 = vpack.c.bf16 %v84_v36, %v83_v35  ;;  %v85_v41 = vld [vmem:[#allocation5 + $0x50] sm:$0xff]  ;;  %v103_v43 = vld [vmem:[#allocation5 + $0xe0] sm:$0xff]  ;;  %p330_p5 = por %p329_p4, %p328_p3 }
  0x2f   :  { %240 = vmatpush3.bf16.msra.mxu0 %v239_v19  ;;  %v253_v40 = vpack.c.bf16 %v102_v38, %v101_v37  ;;  %v86_v42 = vld [vmem:[#allocation5 + $0x58] sm:$0xff]  ;;  %v104_v44 = vld [vmem:[#allocation5 + $0xe8] sm:$0xff]  ;;  %v87_v47 = vld [vmem:[#allocation5 + $0x60] sm:$0xff] }
  0x30   :  { %242 = vmatprep.subr.bf16.mxu0 %v241_v20  ;;  %v255_v45 = vpack.c.bf16 %v86_v42, %v85_v41  ;;  %v257_v46 = vpack.c.bf16 %v104_v44, %v103_v43  ;;  %v88_v48 = vld [vmem:[#allocation5 + $0x68] sm:$0xff]  ;;  %v105_v49 = vld [vmem:[#allocation5 + $0xf0] sm:$0xff]  ;;  %v106_v50 = vld [vmem:[#allocation5 + $0xf8] sm:$0xff]  ;;  %p331_p6 = pnand %p330_p5, %p324_p2 }
  0x31   :  { %v259_v51 = vpack.c.bf16 %v88_v48, %v87_v47  ;;  %v261_v52 = vpack.c.bf16 %v106_v50, %v105_v49  ;;  %v89_v53 = vld [vmem:[#allocation5 + $0x70] sm:$0xff]  ;;  %v90_v54 = vld [vmem:[#allocation5 + $0x78] sm:$0xff] }
  0x32   :  { %v263_v55 = vpack.c.bf16 %v90_v54, %v89_v53 }
  0x33   :  { %244 = vmatpush3.bf16.msra.mxu0 %v243_v27 }
  0x34   :  { %246 = vmatprep.subr.bf16.mxu0 %v245_v28 }
  0x37   :  { %248 = vmatpush3.bf16.msra.mxu0 %v247_v33 }
  0x38   :  { %250 = vmatprep.subr.bf16.mxu0 %v249_v34 }
  0x3b   :  { %252 = vmatpush3.bf16.msra.mxu0 %v251_v39 }
  0x3c   :  { %254 = vmatprep.subr.bf16.mxu0 %v253_v40 }
  0x3f   :  { %256 = vmatpush3.bf16.msra.mxu0 %v255_v45 }
  0x40   :  { %258 = vmatprep.subr.bf16.mxu0 %v257_v46 }
  0x43   :  { %260 = vmatpush3.bf16.msra.mxu0 %v259_v51 }
  0x44   :  { %262 = vmatprep.subr.bf16.mxu0 %v261_v52 }
  0x47   :  { %264 = vmatpush3.bf16.msra.mxu0 %v263_v55 }
  0xa8   :  { %v58_v59 = vpop.permute.xlu0 %57  ;;  %v47_v60 = vpop.permute.xlu1 %46 }
  0xad   :  { %v66_v61 = vpop.permute.xlu0 %65  ;;  %v50_v62 = vpop.permute.xlu1 %49 }
  0xae   :  { %v51_v63 = vsel %vm42_vm0, %v47_v60, %v50_v62  ;;  %v68_v0 = vsel %vm62_vm1, %v66_v61, %v58_v59 }
  0xaf   :  { %vm69_vm2 = vcmp.eq.s32.totalorder %v40_v57, %v51_v63  ;;  %vm70_vm3 = vcmp.eq.s32.totalorder %v41_v58, %v68_v0 }
  0xb0   :  { %196 = vmatprep.mubr.msk.f32.mxu0 %vm70_vm3, %v359_v1 }
  0xb1   :  { %197 = vmatmul.mubr.msk.f32.vlgmr.msra.gmra.mrb[0].mxu0 %vm69_vm2, %v359_v1 }
 0x184   :  { %v230_v2 = vpop.f32.mrb[0].mxu0 }
 0x185   :  { %v231_v3 = vpop.f32.mrb[1].mxu0 }
 0x186   :  { %v232_v4 = vadd.f32 %v231_v3, %v230_v2 }
 0x188   :  { %177 = vst [vmem:[#allocation7] sm:$0xf] %v232_v4 }
 0x189   :  { %334 = shalt.err (!%p331_p6)
}
 0x18a   :  { %s335_s10 = scalar_lea.hbm %s421_s2, 64 }
 0x18b   :  { %p336_p7 = scmp.ne.s32.totalorder %s421_s2, %s335_s10  ;;  %p339_p8 = scmp.lt.u32.totalorder %s335_s10, %s421_s2 }
 0x18d   :  { %p341_p9 = pnand %p339_p8, %p336_p7 }
 0x18f   :  { %344 = shalt.err (!%p341_p9)
}
 0x190   :  { %187 = dma.vmem_to_hbm [thread:$0]  %s185_s6, 64, %s421_s2, [#allocation4]  }
 0x191   :  { %349 = dma.done.wait [#allocation4], 64  }
 0x192   :  { %350 = vsyncadd [#allocation4], 4294967232 }
 0x193   :  { %191 = vsyncpa [#allocation3], 1 }
 0x194   :  { %192 = vsyncpa [#allocation6], 1 }
 0x195   :  { %193 = vsyncpa [#allocation4], 1 }

</bundles_post_ra>
